<compile_context>
chip_gen: v6e
topology: v6e:2x2x1
jax: 0.10.0
libtpu: 0.0.40
codegen_flags: <defaults>
</compile_context>

<pallas_src>
import math

import jax
import jax.numpy as jnp
from jax import lax
from jax.experimental import pallas as pl
from jax.experimental.pallas import tpu as pltpu

H_TYPE_RELU = "relu"
H_TYPE_LINEAR = "linear"
H_TYPE_EXP = "exp"
H_TYPE_SOFTMAX = "softmax"
_F32 = jnp.float32


def _make_kernel(d: int, h_type: str, n_plus_1: int, use_bf16: bool):
    """Kernel body factory; d / h_type / n_plus_1 / use_bf16 are trace-time consts."""
    mm_dtype = jnp.bfloat16 if use_bf16 else jnp.float32

    def kernel(z_ref, m_ref, a_ref, out_ref):
        Zb = z_ref[...].astype(_F32)               # (Bb, d_model, N)
        Bb, dm, N = Zb.shape
        M_aug = m_ref[...]                         # (d_model, d_model) f32
        A_aug = a_ref[...]                         # (d_model, d_model) f32

        Zmm = Zb.astype(mm_dtype)
        M_b = jnp.broadcast_to(M_aug.astype(mm_dtype), (Bb, dm, dm))
        A_b = jnp.broadcast_to(A_aug, (Bb, dm, dm))

        # scores = Z^T (M_aug Z); M_aug's zero last row/column kills the Y row,
        # so this equals (B_l X)^T (C_l X) from the reference module.
        MZ = jnp.einsum("bjk,bkm->bjm", M_b, Zmm,
                        preferred_element_type=_F32)             # (Bb, dm, N)
        Zt = jnp.swapaxes(Zmm, 1, 2)                             # (Bb, N, dm)
        scores = jnp.einsum("bnj,bjm->bnm", Zt, MZ.astype(mm_dtype),
                            preferred_element_type=_F32)         # (Bb, N, N)

        if h_type == H_TYPE_LINEAR:
            h = scores
        elif h_type == H_TYPE_RELU:
            h = jnp.maximum(scores, 0.0)
        elif h_type == H_TYPE_EXP:
            h = jnp.exp(scores * (1.0 / d)) if d != 0 else jnp.exp(scores)
        elif h_type == H_TYPE_SOFTMAX:
            m = jnp.max(scores, axis=-1, keepdims=True)
            e = jnp.exp(scores - m)
            s = jnp.sum(e, axis=-1, keepdims=True)
            inv = pl.reciprocal(s, approx=True)        # EUP slot (nearly free)
            inv = inv * (2.0 - s * inv)                # one Newton step -> fp32 accuracy
            h = e * inv
        else:
            raise ValueError(f"Unknown h_type: {h_type}")

        # Masking mirrors the PyTorch module (n_plus_1 is a compile-time const).
        if n_plus_1 > 0:
            idx = n_plus_1 - 1
            row = lax.broadcasted_iota(jnp.int32, (1, N, 1), 1)
            if h_type == H_TYPE_SOFTMAX:
                h = jnp.where(row == idx, 0.0, h)                   # zero whole row
            else:
                col = lax.broadcasted_iota(jnp.int32, (1, 1, N), 2)
                h = jnp.where((row == idx) & (col == idx), 0.0, h)  # zero diag element

        # Fused update: Z_out = Z + A_aug @ (Z @ h).  The last row of A_aug is
        # [0,...,0,r], so this yields X + A(Xh) and Y + r(Yh) in one matmul pair
        # and a single lane-dense store.
        ZH = jnp.einsum("bdn,bnm->bdm", Zmm, h.astype(mm_dtype),
                        preferred_element_type=_F32)              # (Bb, dm, N)
        out = Zb + jnp.einsum("bij,bjn->bin", A_b, ZH,
                              preferred_element_type=_F32)
        out_ref[...] = out.astype(out_ref.dtype)

    return kernel


def _auto_vmem_limit_bytes():
    try:
        cap = int(pltpu.get_tpu_info().vmem_capacity_bytes)
        return (cap * 3) // 4
    except Exception:  # pragma: no cover - conservative fallback
        return None


def generalized_attention_pallas(Z, A_l, B_l, C_l, r_l, *, d, h_type, n_plus_1,
                                 block_b=None, use_bf16_matmul=False,
                                 vmem_limit_bytes="auto"):
    """Z: (B, d_model, N) float32 with d_model = d + 1. Returns same shape/dtype."""
    Bsz, d_model, N = Z.shape
    assert d_model == d + 1, "d_model must equal d + 1"
    if n_plus_1 > 0 and n_plus_1 > N:
        raise ValueError(f"n_plus_1={n_plus_1} out of range for N={N}")

    if block_b is None:
        # Enough batch rows per grid step to amortize per-step overhead and fill
        # MXU rows for small N, bounded so (block_b, N, N) intermediates stay
        # small, and keeping >= 2 grid steps when possible (v7x megacore).
        cap = max(1, min(8, 512 // max(N, 1)))
        cap = min(cap, max(1, Bsz // 2)) if Bsz > 1 else 1
        block_b = 1
        for cand in range(min(cap, Bsz), 0, -1):
            if Bsz % cand == 0:
                block_b = cand
                break
    if Bsz % block_b != 0:
        raise ValueError(f"batch {Bsz} not divisible by block_b {block_b}")

    # Batch-invariant folded parameters (computed once in the wrapper).
    A_l = A_l.astype(_F32)
    B_l = B_l.astype(_F32)
    C_l = C_l.astype(_F32)
    r_val = jnp.asarray(r_l, _F32).reshape(-1)[0]
    M_aug = jnp.zeros((d_model, d_model), _F32).at[:d, :d].set(B_l.T @ C_l)
    A_aug = (jnp.zeros((d_model, d_model), _F32)
             .at[:d, :d].set(A_l)
             .at[d, d].set(r_val))

    kernel = _make_kernel(d, h_type, n_plus_1, use_bf16_matmul)

    cp_kwargs = dict(dimension_semantics=("parallel",))
    if vmem_limit_bytes == "auto":
        vmem_limit_bytes = _auto_vmem_limit_bytes()
    if vmem_limit_bytes:
        cp_kwargs["vmem_limit_bytes"] = int(vmem_limit_bytes)

    return pl.pallas_call(
        kernel,
        out_shape=jax.ShapeDtypeStruct((Bsz, d_model, N), Z.dtype),
        grid=(Bsz // block_b,),
        in_specs=[
            pl.BlockSpec((block_b, d_model, N), lambda b: (b, 0, 0)),   # Z
            pl.BlockSpec((d_model, d_model), lambda b: (0, 0)),         # M_aug
            pl.BlockSpec((d_model, d_model), lambda b: (0, 0)),         # A_aug
        ],
        out_specs=pl.BlockSpec((block_b, d_model, N), lambda b: (b, 0, 0)),
        compiler_params=pltpu.CompilerParams(**cp_kwargs),
    )(Z, M_aug, A_aug)


def generalized_attention_ref(Z, A_l, B_l, C_l, r_l, *, d, h_type, n_plus_1):
    """Pure-JAX reference mirroring the PyTorch forward."""
    X = Z[:, :d, :]
    Y = Z[:, d:, :]
    U = jnp.einsum("ij,bjn->bin", B_l, X)
    W = jnp.einsum("ij,bjn->bin", C_l, X)
    scores = jnp.einsum("bdn,bdm->bnm", U, W)            # U^T @ W
    if h_type == H_TYPE_LINEAR:
        h = scores
    elif h_type == H_TYPE_RELU:
        h = jnp.maximum(scores, 0.0)
    elif h_type == H_TYPE_EXP:
        h = jnp.exp(scores / d) if d != 0 else jnp.exp(scores)
    elif h_type == H_TYPE_SOFTMAX:
        h = jax.nn.softmax(scores, axis=-1)
        if n_plus_1 > 0:
            h = h.at[:, n_plus_1 - 1, :].set(0.0)
    else:
        raise ValueError(h_type)
    if h_type in (H_TYPE_LINEAR, H_TYPE_RELU, H_TYPE_EXP) and n_plus_1 > 0:
        h = h.at[:, n_plus_1 - 1, n_plus_1 - 1].set(0.0)
    dX = jnp.einsum("ij,bjn->bin", A_l, jnp.einsum("bdn,bnm->bdm", X, h))
    dY = jnp.asarray(r_l).reshape(-1)[0] * jnp.einsum("bdn,bnm->bdm", Y, h)
    return jnp.concatenate([X + dX, Y + dY], axis=1)


if __name__ == "__main__":
    # Small deterministic problem: B=4, d=8 covariates, N=16 tokens.
    B, d, N = 4, 8, 16
    d_model = d + 1

    key = jax.random.PRNGKey(0)
    k_z, k_a, k_b, k_c, k_r = jax.random.split(key, 5)
    Z_in = jax.random.normal(k_z, (B, d_model, N), dtype=jnp.float32)
    A_l = jax.random.normal(k_a, (d, d), dtype=jnp.float32) / math.sqrt(d)
    B_l = jax.random.normal(k_b, (d, d), dtype=jnp.float32) / math.sqrt(d)
    C_l = jax.random.normal(k_c, (d, d), dtype=jnp.float32) / math.sqrt(d)
    r_l = jax.random.normal(k_r, (1,), dtype=jnp.float32)

    ok = True
    for h_type in (H_TYPE_SOFTMAX, H_TYPE_RELU, H_TYPE_EXP, H_TYPE_LINEAR):
        for n_plus_1 in (N, 3):
            out = generalized_attention_pallas(
                Z_in, A_l, B_l, C_l, r_l, d=d, h_type=h_type, n_plus_1=n_plus_1
            )
            out = jax.block_until_ready(out)
            ref = generalized_attention_ref(
                Z_in, A_l, B_l, C_l, r_l, d=d, h_type=h_type, n_plus_1=n_plus_1
            )
            if not jnp.allclose(out, ref, rtol=1e-4, atol=1e-4):
                ok = False
                print(f"MISMATCH h_type={h_type} n_plus_1={n_plus_1}: "
                      f"max abs err {float(jnp.max(jnp.abs(out - ref)))}")

    if ok:
        print("KERNEL_OK")
</pallas_src>

<mosaic_0001>
module attributes {stable_mosaic.version = 11 : i64} {
  func.func @kernel(%arg0: i32, %arg1: memref<2x9x16xf32, #tpu.memory_space<vmem>>, %arg2: memref<9x9xf32, #tpu.memory_space<vmem>>, %arg3: memref<9x9xf32, #tpu.memory_space<vmem>>, %arg4: memref<2x9x16xf32, #tpu.memory_space<vmem>>) attributes {dimension_semantics = [#tpu.dimension_semantics<parallel>], iteration_bounds = array<i64: 2>, scalar_prefetch = 0 : i64, scratch_operands = 0 : i64, tpu.core_type = #tpu.core_type<tc>, window_params = [{transform_indices = @transform_0, window_bounds = array<i64: 2, 9, 16>}, {pipeline_mode = #tpu.pipeline_mode<synchronous>, transform_indices = @transform_1, window_bounds = array<i64: 9, 9>}, {pipeline_mode = #tpu.pipeline_mode<synchronous>, transform_indices = @transform_2, window_bounds = array<i64: 9, 9>}, {transform_indices = @transform_3, window_bounds = array<i64: 2, 9, 16>}]} {
    %c0 = arith.constant 0 : index
    %c0_0 = arith.constant 0 : index
    %c0_1 = arith.constant 0 : index
    %0 = vector.load %arg1[%c0, %c0_0, %c0_1] : memref<2x9x16xf32, #tpu.memory_space<vmem>>, vector<2x9x16xf32>
    %c0_2 = arith.constant 0 : index
    %c0_3 = arith.constant 0 : index
    %1 = vector.load %arg2[%c0_2, %c0_3] : memref<9x9xf32, #tpu.memory_space<vmem>>, vector<9x9xf32>
    %c0_4 = arith.constant 0 : index
    %c0_5 = arith.constant 0 : index
    %2 = vector.load %arg3[%c0_4, %c0_5] : memref<9x9xf32, #tpu.memory_space<vmem>>, vector<9x9xf32>
    %3 = vector.shape_cast %1 : vector<9x9xf32> to vector<1x9x9xf32>
    %4 = vector.broadcast %3 : vector<1x9x9xf32> to vector<2x9x9xf32>
    %5 = vector.shape_cast %2 : vector<9x9xf32> to vector<1x9x9xf32>
    %6 = vector.broadcast %5 : vector<1x9x9xf32> to vector<2x9x9xf32>
    "tpu.trace_start"() <{level = 10 : i32, message = "bjk,bkm->bjm"}> : () -> ()
    %cst = arith.constant dense<0.000000e+00> : vector<2x9x16xf32>
    %7 = tpu.matmul %4, %0, %cst {dimension_numbers = #tpu.dot_dimension_numbers<[2], [1], [1], [2], [0, 0, 0, 1, 1, 2], [0], [0]>} : vector<2x9x9xf32>, vector<2x9x16xf32>, vector<2x9x16xf32> -> vector<2x9x16xf32>
    "tpu.trace_stop"() : () -> ()
    %8 = tpu.transpose %0, [0, 2, 1] : vector<2x9x16xf32> -> vector<2x16x9xf32>
    "tpu.trace_start"() <{level = 10 : i32, message = "bnj,bjm->bnm"}> : () -> ()
    %cst_6 = arith.constant dense<0.000000e+00> : vector<2x16x16xf32>
    %9 = tpu.matmul %8, %7, %cst_6 {dimension_numbers = #tpu.dot_dimension_numbers<[2], [1], [1], [2], [0, 0, 0, 1, 1, 2], [0], [0]>} : vector<2x16x9xf32>, vector<2x9x16xf32>, vector<2x16x16xf32> -> vector<2x16x16xf32>
    "tpu.trace_stop"() : () -> ()
    %cst_7 = arith.constant dense<0xFF800000> : vector<2x16xf32>
    %10 = vector.multi_reduction <maximumf>, %9, %cst_7 [2] : vector<2x16x16xf32> to vector<2x16xf32>
    %11 = vector.shape_cast %10 : vector<2x16xf32> to vector<2x16x1xf32>
    %12 = vector.broadcast %11 : vector<2x16x1xf32> to vector<2x16x16xf32>
    %13 = arith.subf %9, %12 : vector<2x16x16xf32>
    %14 = math.exp %13 : vector<2x16x16xf32>
    %cst_8 = arith.constant dense<0.000000e+00> : vector<2x16xf32>
    %15 = vector.multi_reduction <add>, %14, %cst_8 [2] : vector<2x16x16xf32> to vector<2x16xf32>
    %16 = vector.shape_cast %15 : vector<2x16xf32> to vector<2x16x1xf32>
    %17 = tpu.reciprocal %16 {approx = true} : vector<2x16x1xf32> -> vector<2x16x1xf32>
    %18 = arith.mulf %16, %17 : vector<2x16x1xf32>
    %cst_9 = arith.constant 2.000000e+00 : f32
    %19 = vector.broadcast %cst_9 : f32 to vector<2x16x1xf32>
    %20 = arith.subf %19, %18 : vector<2x16x1xf32>
    %21 = arith.mulf %17, %20 : vector<2x16x1xf32>
    %22 = vector.broadcast %21 : vector<2x16x1xf32> to vector<2x16x16xf32>
    %23 = arith.mulf %14, %22 : vector<2x16x16xf32>
    %24 = tpu.iota {dimensions = array<i32: 1>} : vector<1x16x1xi32>
    %c15_i32 = arith.constant 15 : i32
    %25 = vector.broadcast %c15_i32 : i32 to vector<1x16x1xi32>
    %26 = arith.cmpi eq, %24, %25 : vector<1x16x1xi32>
    %cst_10 = arith.constant 0.000000e+00 : f32
    %27 = vector.shape_cast %26 : vector<1x16x1xi1> to vector<1x16x1xi1>
    %28 = vector.broadcast %27 : vector<1x16x1xi1> to vector<2x16x16xi1>
    %29 = vector.broadcast %cst_10 : f32 to vector<2x16x16xf32>
    %30 = arith.select %28, %29, %23 : vector<2x16x16xi1>, vector<2x16x16xf32>
    "tpu.trace_start"() <{level = 10 : i32, message = "bdn,bnm->bdm"}> : () -> ()
    %cst_11 = arith.constant dense<0.000000e+00> : vector<2x9x16xf32>
    %31 = tpu.matmul %0, %30, %cst_11 {dimension_numbers = #tpu.dot_dimension_numbers<[2], [1], [1], [2], [0, 0, 0, 1, 1, 2], [0], [0]>} : vector<2x9x16xf32>, vector<2x16x16xf32>, vector<2x9x16xf32> -> vector<2x9x16xf32>
    "tpu.trace_stop"() : () -> ()
    "tpu.trace_start"() <{level = 10 : i32, message = "bij,bjn->bin"}> : () -> ()
    %cst_12 = arith.constant dense<0.000000e+00> : vector<2x9x16xf32>
    %32 = tpu.matmul %6, %31, %cst_12 {dimension_numbers = #tpu.dot_dimension_numbers<[2], [1], [1], [2], [0, 0, 0, 1, 1, 2], [0], [0]>} : vector<2x9x9xf32>, vector<2x9x16xf32>, vector<2x9x16xf32> -> vector<2x9x16xf32>
    "tpu.trace_stop"() : () -> ()
    %33 = arith.addf %0, %32 : vector<2x9x16xf32>
    %c0_13 = arith.constant 0 : index
    %c0_14 = arith.constant 0 : index
    %c0_15 = arith.constant 0 : index
    %34 = vector.load %arg4[%c0_13, %c0_14, %c0_15] : memref<2x9x16xf32, #tpu.memory_space<vmem>>, vector<2x9x16xf32>
    tpu.vector_store %arg4[%c0_13, %c0_14, %c0_15], %33 {strides = array<i32>} : memref<2x9x16xf32, #tpu.memory_space<vmem>>, vector<2x9x16xf32>,
    return
  }
  func.func @transform_0(%arg0: i32) -> (i32, i32, i32) {
    %c0_i32 = arith.constant 0 : i32
    %c0_i32_0 = arith.constant 0 : i32
    %c0_i32_1 = arith.constant 0 : i32
    return %arg0, %c0_i32, %c0_i32_0 : i32, i32, i32
  }
  func.func @transform_1(%arg0: i32) -> (i32, i32) {
    %c0_i32 = arith.constant 0 : i32
    %c0_i32_0 = arith.constant 0 : i32
    %c0_i32_1 = arith.constant 0 : i32
    return %c0_i32, %c0_i32_0 : i32, i32
  }
  func.func @transform_2(%arg0: i32) -> (i32, i32) {
    %c0_i32 = arith.constant 0 : i32
    %c0_i32_0 = arith.constant 0 : i32
    %c0_i32_1 = arith.constant 0 : i32
    return %c0_i32, %c0_i32_0 : i32, i32
  }
  func.func @transform_3(%arg0: i32) -> (i32, i32, i32) {
    %c0_i32 = arith.constant 0 : i32
    %c0_i32_0 = arith.constant 0 : i32
    %c0_i32_1 = arith.constant 0 : i32
    return %arg0, %c0_i32, %c0_i32_0 : i32, i32, i32
  }
}

</mosaic_0001>

<bundles_post_ra>
// kernel: tpu_custom_call.1
= control target key start
LH: loop header
LB: loop body
LE: loop exit
PB: predicated region body
PF: predicated region fallthrough
CT: control target
= control target key end

     0   :  { %s1225_s12 = smov 0   ;;  %s1327_s0 = inlined_call_operand.vmem [shape: f32[4,9,16], index: 0, kind: input, shape index: {}]   ;;  %s1328_s1 = inlined_call_operand.vmem [shape: f32[9,9], index: 1, kind: input, shape index: {}]   ;;  %s1329_s2 = inlined_call_operand.vmem [shape: f32[9,9], index: 2, kind: input, shape index: {}]   ;;  %s1330_s3 = inlined_call_operand.vmem [shape: f32[4,9,16], index: 3, kind: output, shape index: {}]  }
   0x1 LB: > { %s1042_s13 = sadd.s32 4294967295, %s1203_s12   ;;  %p1046_p0 = scmp.ge.s32.totalorder %s1203_s12, 1  ;;  %s1203_s12 = sphi %s1225_s12, %s13_s12  }
   0x2   : > { %p139_p1 = scmp.lt.s32.totalorder %s1203_s12, 3 }
   0x4   : > { %p140_p2 = pnand %p1046_p0, %p139_p1 }
   0x5   : > { %s1047_s14 = sshll.u32 (!%p140_p2), %s1042_s13, 1 }
   0x6   : > { %143 = sbr.rel (%p140_p2) target bundleno = 1132 (0x46c), region = 32  ;;  %p166_p3 = scmp.lt.s32.totalorder (!%p140_p2), %s1047_s14, 3 }
   0xb   : > { %v183_v0 = vld [vmem:[%s1328_s1] sm:$0xff]  ;;  %vm187_vm0 = vcmask 72704   ;;  %s1332_s14 = smov (!%p166_p3, %s1047_s14), 3  ;;  %vm194_vm1 = vcmask 1040384   ;;  %v184_v5 = vld [vmem:[%s1328_s1 + $0x8] sm:$0x1]  ;;  %v640_v46 = vlaneseq }
   0xc   : > { %1120 = vmatprep.mubr.msk.f32.mxu0 %vm187_vm0, %v183_v0  ;;  %1127 = vmatprep.mubr.msk.f32.mxu1 %vm187_vm0, %v183_v0  ;;  %s1081_s17 = sshll.u32 %s1332_s14, 4  ;;  %vm583_vm2 = vcmask 130048   ;;  %vm980_vm4 = vcmask 122880  }
   0xd   : > { %s170_s20 = scalar_lea.vmem %s1327_s0, %s1081_s17  ;;  %v641_v47 = vshrl.u32 %v640_v46, 7  ;;  %s177_s29 = scalar_lea.vmem %s1330_s3, %s1081_s17 }
   0xe   : > { %v1246_v1 = vld [vmem:[%s170_s20 + $0x8] sm:$0x1]  ;;  %v1248_v2 = vld [vmem:[%s170_s20 + $0x18] sm:$0x1]  ;;  %v1250_v3 = vld [vmem:[%s170_s20] sm:$0xff] }
   0xf   : > { %1116 = vmatprep.subr.msk.mxu0 %vm194_vm1, %v1246_v1  ;;  %1123 = vmatprep.subr.msk.mxu1 %vm194_vm1, %v1248_v2  ;;  %v1256_v4 = vld [vmem:[%s170_s20 + $0x10] sm:$0xff]  ;;  %v642_v52 = vadd.s32 8, %v641_v47 }
  0x10   : > { %1117 = vmatpush3.msk.msra.mxu0 %vm194_vm1, %v1246_v1  ;;  %1124 = vmatpush3.msk.msra.mxu1 %vm194_vm1, %v1248_v2 }
  0x11   : > { %1118 = vmatprep.subr.mxu0 %v1250_v3  ;;  %1125 = vmatprep.subr.mxu1 %v1256_v4  ;;  %vm1083_vm3 = vcmp.ne.s32.totalorder %v642_v52, 15 }
  0x12   : > { %1119 = vmatpush3.msra.mxu0 %v1250_v3  ;;  %1126 = vmatpush3.msra.mxu1 %v1256_v4 }
  0x13   : > { %1121 = vmatmul.mubr.msk.f32.vlgmr.msra.gmra.mxu0 %vm187_vm0, %v184_v5  ;;  %1128 = vmatmul.mubr.msk.f32.vlgmr.msra.gmra.mxu1 %vm187_vm0, %v184_v5 }
  0x14   : > { %383 = vxpose.xlu1.b32.start [1/2] (short) (narrow) %v1256_v4, 16  ;;  %351 = vxpose.xlu0.b32.start [1/2] (short) (narrow) %v1250_v3, 16 }
  0x18   : > { %384 = vxpose.xlu1.b32.end [2/2] (short) (narrow) %v1248_v2, 16  ;;  %352 = vxpose.xlu0.b32.end [2/2] (short) (narrow) %v1246_v1, 16 }
  0x90   : > { %v399_v6 = vpop.trf.xlu1  ;;  %v367_v7 = vpop.trf.xlu0 }
  0x91   : > { %1141 = vmatprep.mubr.msk.f32.mxu1 %vm187_vm0, %v399_v6  ;;  %1134 = vmatprep.mubr.msk.f32.mxu0 %vm187_vm0, %v367_v7 }
  0x94   : > { %v400_v10 = vpop.trf.xlu1  ;;  %v368_v11 = vpop.trf.xlu0 }
  0xd3   : > { %v1129_v8 = vpop.f32.mrf.mxu1  ;;  %v1122_v9 = vpop.f32.mrf.mxu0 }
  0xd4   : > { %1130 = vmatprep.subr.msk.mxu0 %vm194_vm1, %v1122_v9  ;;  %1137 = vmatprep.subr.msk.mxu1 %vm194_vm1, %v1129_v8 }
  0xd5   : > { %v264_v12 = vpop.f32.mrf.mxu0  ;;  %v342_v13 = vpop.f32.mrf.mxu1  ;;  %1131 = vmatpush3.msk.msra.mxu0 %vm194_vm1, %v1122_v9  ;;  %1138 = vmatpush3.msk.msra.mxu1 %vm194_vm1, %v1129_v8  ;;  %v185_v9 = vld [vmem:[%s1329_s2] sm:$0xff] }
  0xd6   : > { %1132 = vmatprep.subr.mxu0 %v264_v12  ;;  %1139 = vmatprep.subr.mxu1 %v342_v13 }
  0xd7   : > { %1140 = vmatpush3.msra.mxu1 %v342_v13  ;;  %1133 = vmatpush3.msra.mxu0 %v264_v12  ;;  %v186_v12 = vld [vmem:[%s1329_s2 + $0x8] sm:$0x1] }
  0xd8   : > { %1135 = vmatmul.mubr.msk.f32.vlgmr.msra.gmra.mxu0 %vm187_vm0, %v368_v11  ;;  %1142 = vmatmul.mubr.msk.f32.vlgmr.msra.gmra.mxu1 %vm187_vm0, %v400_v10 }
  0xd9   : > { %1148 = vmatprep.mubr.msk.f32.mxu0 %vm583_vm2, %v1250_v3  ;;  %1155 = vmatprep.mubr.msk.f32.mxu1 %vm583_vm2, %v1256_v4 }
 0x198   : > { %v1136_v14 = vpop.f32.mrf.mxu0  ;;  %v1143_v15 = vpop.f32.mrf.mxu1 }
 0x199   : > { %v593_v16 = vsel %vm583_vm2, %v1143_v15, -inf  ;;  %v587_v17 = vsel %vm583_vm2, %v1136_v14, -inf }
 0x19a   : > { %594 = vmax.xlane.f32.xlu1 %v593_v16  ;;  %588 = vmax.xlane.f32.xlu0 %v587_v17  ;;  %v490_v18 = vpop.f32.mrf.mxu0  ;;  %v574_v20 = vpop.f32.mrf.mxu1 }
 0x19b   : > { %v584_v19 = vsel %vm583_vm2, %v490_v18, -inf  ;;  %v590_v21 = vsel %vm583_vm2, %v574_v20, -inf }
 0x19e   : > { %585 = vmax.xlane.f32.xlu1 %v584_v19 }
 0x1a2   : > { %591 = vmax.xlane.f32.xlu1 %v590_v21 }
 0x223   : > { %v595_v22 = vpop.xlane.xlu1 %594  ;;  %v589_v23 = vpop.xlane.xlu0 %588 }
 0x224   : > { %v599_v24 = vsub.f32 %v1143_v15, %v595_v22  ;;  %v597_v25 = vsub.f32 %v1136_v14, %v589_v23 }
 0x226   : > { %v606_v26 = vmul.f32 1.442695, %v599_v24  ;;  %v602_v27 = vmul.f32 1.442695, %v597_v25 }
 0x227   : > { %v586_v28 = vpop.xlane.xlu1 %585 }
 0x228   : > { %1181 = vpow2.f32 %v606_v26  ;;  %v596_v29 = vsub.f32 %v490_v18, %v586_v28 }
 0x229   : > { %1183 = vpow2.f32 %v602_v27 }
 0x22a   : > { %v600_v30 = vmul.f32 1.442695, %v596_v29 }
 0x22b   : > { %v592_v31 = vpop.xlane.xlu1 %591 }
 0x22c   : > { %1185 = vpow2.f32 %v600_v30  ;;  %v598_v32 = vsub.f32 %v574_v20, %v592_v31 }
 0x22e   : > { %v604_v33 = vmul.f32 1.442695, %v598_v32 }
 0x230   : > { %1187 = vpow2.f32 %v604_v33 }
 0x235   : > { %v1182_v34 = vpop.eup %1181 }
 0x236   : > { %v1184_v35 = vpop.eup %1183  ;;  %v617_v36 = vsel %vm583_vm2, %v1182_v34, 0.0 }
 0x237   : > { %v611_v37 = vsel %vm583_vm2, %v1184_v35, 0.0  ;;  %618 = vadd.xlane.f32.xlu1 %v617_v36 }
 0x238   : > { %612 = vadd.xlane.f32.xlu0 %v611_v37 }
 0x239   : > { %v1186_v38 = vpop.eup %1185 }
 0x23a   : > { %v608_v39 = vsel %vm583_vm2, %v1186_v38, 0.0 }
 0x23c   : > { %609 = vadd.xlane.f32.xlu0 %v608_v39 }
 0x23d   : > { %v1188_v40 = vpop.eup %1187 }
 0x23e   : > { %v614_v41 = vsel %vm583_vm2, %v1188_v40, 0.0 }
 0x23f   : > { %615 = vadd.xlane.f32.xlu1 %v614_v41 }
 0x2c0   : > { %v619_v42 = vpop.xlane.xlu1 %618 }
 0x2c1   : > { %v613_v43 = vpop.xlane.xlu0 %612  ;;  %1189 = vrcp.f32 %v619_v42 }
 0x2c2   : > { %1191 = vrcp.f32 %v613_v43 }
 0x2c5   : > { %v610_v44 = vpop.xlane.xlu0 %609 }
 0x2c6   : > { %1193 = vrcp.f32 %v610_v44 }
 0x2c8   : > { %v616_v45 = vpop.xlane.xlu1 %615 }
 0x2c9   : > { %1195 = vrcp.f32 %v616_v45 }
 0x2ce   : > { %v1190_v48 = vpop.eup %1189 }
 0x2cf   : > { %v1192_v49 = vpop.eup %1191  ;;  %v627_v50 = vmul.f32 %v1190_v48, %v619_v42 }
 0x2d0   : > { %v625_v51 = vmul.f32 %v1192_v49, %v613_v43 }
 0x2d1   : > { %v631_v53 = vsub.f32 2.0, %v627_v50 }
 0x2d2   : > { %v629_v54 = vsub.f32 2.0, %v625_v51 }
 0x2d3   : > { %v1194_v55 = vpop.eup %1193  ;;  %v635_v56 = vmul.f32 %v1190_v48, %v631_v53 }
 0x2d4   : > { %v633_v57 = vmul.f32 %v1192_v49, %v629_v54  ;;  %v624_v58 = vmul.f32 %v1194_v55, %v610_v44 }
 0x2d5   : > { %v639_v59 = vmul.f32 %v1182_v34, %v635_v56 }
 0x2d6   : > { %v1196_v60 = vpop.eup %1195  ;;  %v637_v61 = vmul.f32 %v1184_v35, %v633_v57  ;;  %v628_v62 = vsub.f32 2.0, %v624_v58 }
 0x2d7   : > { %v626_v63 = vmul.f32 %v1196_v60, %v616_v45  ;;  %1151 = vmatprep.subr.msk.mxu1 %vm1083_vm3, %v639_v59 }
 0x2d8   : > { %v632_v0 = vmul.f32 %v1194_v55, %v628_v62  ;;  %1144 = vmatprep.subr.msk.mxu0 %vm1083_vm3, %v637_v61  ;;  %1152 = vmatpush3.msk.msra.mxu1 %vm1083_vm3, %v639_v59 }
 0x2d9   : > { %v630_v5 = vsub.f32 2.0, %v626_v63  ;;  %1145 = vmatpush3.msk.msra.mxu0 %vm1083_vm3, %v637_v61 }
 0x2da   : > { %v636_v6 = vmul.f32 %v1186_v38, %v632_v0 }
 0x2db   : > { %v634_v7 = vmul.f32 %v1196_v60, %v630_v5 }
 0x2dc   : > { %1146 = vmatprep.subr.mxu0 %v636_v6 }
 0x2dd   : > { %1147 = vmatpush3.msra.mxu0 %v636_v6  ;;  %v638_v8 = vmul.f32 %v1188_v40, %v634_v7 }
 0x2de   : > { %1149 = vmatmul.mubr.msk.f32.vlgmr.msra.gmra.mxu0 %vm583_vm2, %v1246_v1 }
 0x2df   : > { %1153 = vmatprep.subr.mxu1 %v638_v8  ;;  %1162 = vmatprep.mubr.msk.f32.mxu0 %vm187_vm0, %v185_v9 }
 0x2e0   : > { %1154 = vmatpush3.msra.mxu1 %v638_v8 }
 0x2e1   : > { %1156 = vmatmul.mubr.msk.f32.vlgmr.msra.gmra.mxu1 %vm583_vm2, %v1248_v2 }
 0x2e2   : > { %1169 = vmatprep.mubr.msk.f32.mxu1 %vm187_vm0, %v185_v9 }
 0x39e   : > { %v1150_v10 = vpop.f32.mrf.mxu0 }
 0x39f   : > { %1158 = vmatprep.subr.msk.mxu0 %vm194_vm1, %v1150_v10 }
 0x3a0   : > { %v724_v11 = vpop.f32.mrf.mxu0  ;;  %1159 = vmatpush3.msk.msra.mxu0 %vm194_vm1, %v1150_v10 }
 0x3a1   : > { %1160 = vmatprep.subr.mxu0 %v724_v11  ;;  %v1157_v13 = vpop.f32.mrf.mxu1 }
 0x3a2   : > { %1161 = vmatpush3.msra.mxu0 %v724_v11  ;;  %1165 = vmatprep.subr.msk.mxu1 %vm194_vm1, %v1157_v13 }
 0x3a3   : > { %v804_v14 = vpop.f32.mrf.mxu1  ;;  %1166 = vmatpush3.msk.msra.mxu1 %vm194_vm1, %v1157_v13  ;;  %1163 = vmatmul.mubr.msk.f32.vlgmr.msra.gmra.mxu0 %vm187_vm0, %v186_v12 }
 0x3a4   : > { %1167 = vmatprep.subr.mxu1 %v804_v14 }
 0x3a5   : > { %1168 = vmatpush3.msra.mxu1 %v804_v14 }
 0x3a6   : > { %1170 = vmatmul.mubr.msk.f32.vlgmr.msra.gmra.mxu1 %vm187_vm0, %v186_v12 }
 0x463   : > { %v1164_v15 = vpop.f32.mrf.mxu0 }
 0x464   : > { %v976_v16 = vadd.f32 %v1164_v15, %v1246_v1 }
 0x465   : > { %v888_v17 = vpop.f32.mrf.mxu0 }
 0x466   : > { %981 = vst.msk [vmem:[%s177_s29 + $0x8] sm:$0x1] %vm980_vm4, %v976_v16  ;;  %v975_v18 = vadd.f32 %v888_v17, %v1250_v3  ;;  %v1171_v19 = vpop.f32.mrf.mxu1 }
 0x467   : > { %v978_v20 = vadd.f32 %v1171_v19, %v1248_v2 }
 0x468   : > { %979 = vst.msk [vmem:[%s177_s29] sm:$0xff] %vm583_vm2, %v975_v18  ;;  %v966_v21 = vpop.f32.mrf.mxu1 }
 0x469   : > { %983 = vst.msk [vmem:[%s177_s29 + $0x18] sm:$0x1] %vm980_vm4, %v978_v20  ;;  %v977_v22 = vadd.f32 %v966_v21, %v1256_v4 }
 0x46b   : > { %982 = vst.msk [vmem:[%s177_s29 + $0x10] sm:$0xff] %vm583_vm2, %v977_v22 }
 0x46c PF: > { %s13_s12 = sadd.s32 1, %s1203_s12  }
 0x46d   : > { %p10_p4 = scmp.ge.s32.totalorder %s13_s12, 4  }
 0x46f   :  { %12 = sbr.rel (!%p10_p4) target bundleno = 1 (0x1), region = 62 }

</bundles_post_ra>
